<compile_context>
chip_gen: v5e
topology: v5e:2x2
jax: 0.10.0
libtpu: 0.0.40
codegen_flags: <defaults>
</compile_context>

<pallas_src>
import jax
import jax.numpy as jnp
from jax import lax
from jax.experimental import pallas as pl
from jax.experimental.pallas import tpu as pltpu


def _round_up(x, m):
    return ((x + m - 1) // m) * m


def _leaky_relu(x, slope):
    return jnp.where(x >= 0, x, slope * x)


def _gat_v2_kernel(hpk_hbm, es_ref, nbr_col_ref, tgt_row_ref, out_ref, h_sc, dma_sem):
    """Per edge-block gather / weight / scatter-add into a resident per-core accumulator.

    hpk_hbm : [Np, Hp] packed node block (h | 1.0 denom column), compute dtype, pl.ANY.
    es_ref  : [TE, 1]  f32 globally pre-shifted logits (padded edges = -1e30 -> exp = 0).
    nbr_col : [TE, 1]  i32 neighbour index per edge (gather one-hot, column layout).
    tgt_row : [1, TE]  i32 target index per edge (scatter one-hot, lane-major layout).
    out_ref : [Np, Hp] f32 per-core accumulator (resident across the edge axis).
    h_sc    : [Np, Hp] VMEM copy of hpk_hbm.
    """
    k = pl.program_id(1)
    TE = es_ref.shape[0]
    Np = h_sc.shape[0]
    cdt = h_sc.dtype

    # One-time per-core init: DMA the packed node block once; zero the accumulator.
    @pl.when(k == 0)
    def _init():
        cp = pltpu.make_async_copy(hpk_hbm, h_sc, dma_sem)
        cp.start()
        cp.wait()
        out_ref[...] = jnp.zeros_like(out_ref)

    # One-hot operands built directly in the layouts the MXU wants, single bool->cdt cast.
    ids_en = lax.broadcasted_iota(jnp.int32, (TE, Np), 1)
    ids_ne = lax.broadcasted_iota(jnp.int32, (Np, TE), 0)
    oh_nbr_en = (nbr_col_ref[...] == ids_en).astype(cdt)      # [TE, Np] gather one-hot
    oh_tgt_ne = (tgt_row_ref[...] == ids_ne).astype(cdt)      # [Np, TE] scatter one-hot

    # Gather h_j plus the packed constant-1 softmax-denominator column in one matmul.
    gath = jnp.dot(oh_nbr_en, h_sc[...], preferred_element_type=jnp.float32)   # [TE, Hp]

    # Softmax numerators (pre-shifted in the wrapper, <= 1; EUP slot).  All f32 math.
    p = jnp.exp(es_ref[...])                                                   # [TE, 1]
    msg = (p * gath).astype(cdt)                                               # [TE, Hp]

    # Pure accumulate (no rescale needed thanks to the global pre-shift).
    out_ref[...] += jnp.dot(oh_tgt_ne, msg, preferred_element_type=jnp.float32)


def _pick_edge_tile(n_edges, np_pad, hp_pad, comp_bytes, vmem_budget_bytes):
    """Largest edge tile (multiple of 128, <= 4096) whose per-core VMEM working set fits
    the budget: resident accumulator/output + h scratch, double-buffered streamed blocks,
    and the one-hot / gathered temporaries."""
    resident = np_pad * hp_pad * (2 * 4 + comp_bytes)          # out (2 bufs, f32) + h_sc
    per_edge = (2 * np_pad * comp_bytes                        # the two one-hots
                + hp_pad * (4 + comp_bytes)                    # gathered f32 + msg
                + 3 * 4 * 2)                                   # streamed (es,nbr,tgt) x2
    avail = max(vmem_budget_bytes - resident - (2 << 20), per_edge * 128)
    te = avail // per_edge
    te = max(128, min(4096, (te // 128) * 128))
    e_pad8 = _round_up(max(n_edges, 1), 8)
    return e_pad8 if e_pad8 <= te else te


def graph_attention_layer_v2(node_features, edge_features, edge_index, params,
                             scaling=0.2, *, compute_dtype=jnp.bfloat16,
                             edge_tile=None, num_cores=2,
                             vmem_budget_bytes=40 * 1024 * 1024,
                             interpret=False):
    """Pallas forward pass.  params = (w, bw, we, bwe, a, ba), weights in [in, out]."""
    w, bw, we, bwe, a, ba = params
    del ba  # constant within each softmax group -> cancels exactly in alpha.
    f32 = jnp.float32
    N = node_features.shape[0]
    E = edge_features.shape[0]
    H = w.shape[1]

    # --------------- dense projections + per-edge scalar logits (XLA) ---------------
    w_f = jnp.asarray(w, f32)
    bw_f = jnp.asarray(bw, f32).reshape(-1)
    we_f = jnp.asarray(we, f32)
    bwe_f = jnp.asarray(bwe, f32).reshape(-1)
    a_f = jnp.asarray(a, f32).reshape(3 * H, 1)

    h = _leaky_relu(node_features.astype(f32) @ w_f + bw_f, scaling)           # [N, H]
    s_j = h @ a_f[H:2 * H]                                                     # [N, 1]
    e_edge = _leaky_relu(edge_features.astype(f32) @ we_f + bwe_f, scaling) @ a_f[2 * H:]
    tgt = edge_index[0].astype(jnp.int32)
    nbr = edge_index[1].astype(jnp.int32)
    e_logit = s_j[nbr, 0] + e_edge[:, 0]                                       # [E]
    e_shift = e_logit - jnp.max(e_logit)          # global shift cancels in the softmax

    # ------------------------------ padding / tiling ------------------------------
    Hp = _round_up(H + 1, 128)                # + packed softmax-denominator column
    Np = _round_up(N + 1, 16)                 # + dummy row absorbs padded edges
    comp_bytes = jnp.dtype(compute_dtype).itemsize
    e_pad8 = _round_up(max(E, 1), 8)

    if edge_tile is None:
        TE = _pick_edge_tile(E, Np, Hp, comp_bytes, vmem_budget_bytes)
    else:
        TE = max(128, _round_up(int(edge_tile), 128))   # lane divisibility for (1, TE)
    if e_pad8 <= TE:
        TE = e_pad8                           # single full-extent block (any size OK)
        nb_total = 1
    else:
        nb_total = pl.cdiv(E, TE)
    nc = max(1, min(int(num_cores), nb_total))          # cores actually used
    nbh = pl.cdiv(nb_total, nc)                          # edge blocks per core
    Ep = TE * nbh * nc

    es_pad = jnp.full((Ep, 1), -1e30, f32).at[:E, 0].set(e_shift)   # padded -> exp = 0
    nbr_col = jnp.zeros((Ep, 1), jnp.int32).at[:E, 0].set(nbr)
    tgt_row = jnp.full((1, Ep), N, jnp.int32).at[0, :E].set(tgt)    # padded -> dummy row

    h_packed = (jnp.zeros((Np, Hp), f32)
                .at[:N, :H].set(h)
                .at[:, H].set(1.0)).astype(compute_dtype)            # [Np, Hp]

    # -------------------------------- Pallas kernel --------------------------------
    out2d = pl.pallas_call(
        _gat_v2_kernel,
        out_shape=jax.ShapeDtypeStruct((nc * Np, Hp), f32),
        grid_spec=pltpu.PrefetchScalarGridSpec(
            num_scalar_prefetch=0,
            grid=(nc, nbh),
            in_specs=[
                pl.BlockSpec(memory_space=pl.ANY),                      # packed h (HBM)
                pl.BlockSpec((TE, 1), lambda c, k: (c * nbh + k, 0)),   # shifted logits
                pl.BlockSpec((TE, 1), lambda c, k: (c * nbh + k, 0)),   # nbr (column)
                pl.BlockSpec((1, TE), lambda c, k: (0, c * nbh + k)),   # tgt (lane-major)
            ],
            out_specs=pl.BlockSpec((Np, Hp), lambda c, k: (c, 0)),      # per-core slab
            scratch_shapes=[
                pltpu.VMEM((Np, Hp), compute_dtype),                    # packed h copy
                pltpu.SemaphoreType.DMA,                                # h DMA semaphore
            ],
        ),
        compiler_params=pltpu.CompilerParams(
            dimension_semantics=("parallel", "arbitrary"),
            vmem_limit_bytes=int(vmem_budget_bytes)),
        interpret=interpret,
    )(h_packed, es_pad, nbr_col, tgt_row)

    # ----------- cross-core combine + softmax normalization + activation -----------
    acc = out2d.reshape(nc, Np, Hp).sum(axis=0) if nc > 1 else out2d
    denom = acc[:N, H:H + 1]                  # sum_j exp(e_ij - gmax) per target node
    safe = jnp.where(denom > 0.0, denom, 1.0)
    out = jnp.where(denom > 0.0, acc[:N, :H] / safe, 0.0)     # isolated nodes -> 0
    # TODO(synk): attention-score dropout treated as identity (inference mode).
    return _leaky_relu(out, scaling)


def _reference(node_features, edge_features, edge_index, params, scaling=0.2):
    """Pure-JAX reference mirroring the PyTorch module (eval-mode dropout)."""
    w, bw, we, bwe, a, ba = params
    lr = lambda x: jnp.where(x >= 0, x, scaling * x)
    N = node_features.shape[0]
    h = lr(node_features @ w + bw)
    eh = lr(edge_features @ we + bwe)
    tgt = edge_index[0]
    nbr = edge_index[1]
    eij = jnp.concatenate([h[tgt], h[nbr], eh], axis=-1) @ a + ba      # [E, 1]
    e = eij[:, 0]
    m = jax.ops.segment_max(e, tgt, num_segments=N)
    p = jnp.exp(e - m[tgt])
    s = jax.ops.segment_sum(p, tgt, num_segments=N)
    alpha = (p / s[tgt])[:, None]
    out = jax.ops.segment_sum(alpha * h[nbr], tgt, num_segments=N)
    return lr(out)


if __name__ == "__main__":
    def make_problem(key, n_nodes, n_edges, n_nf, n_ef, n_hidden):
        ks = jax.random.split(key, 9)
        node_features = jax.random.normal(ks[0], (n_nodes, n_nf), jnp.float32)
        edge_features = jax.random.normal(ks[1], (n_edges, n_ef), jnp.float32)
        edge_index = jax.random.randint(ks[2], (2, n_edges), 0, n_nodes, jnp.int32)
        w = 0.1 * jax.random.normal(ks[3], (n_nf, n_hidden), jnp.float32)
        bw = 0.1 * jax.random.normal(ks[4], (n_hidden,), jnp.float32)
        we = 0.1 * jax.random.normal(ks[5], (n_ef, n_hidden), jnp.float32)
        bwe = 0.1 * jax.random.normal(ks[6], (n_hidden,), jnp.float32)
        a = 0.1 * jax.random.normal(ks[7], (3 * n_hidden, 1), jnp.float32)
        ba = 0.1 * jax.random.normal(ks[8], (1,), jnp.float32)
        return node_features, edge_features, edge_index, (w, bw, we, bwe, a, ba)

    scaling = 0.2
    k1, k2 = jax.random.split(jax.random.PRNGKey(0))

    # Case 1: small graph, single edge block, bf16 fast path.
    nf1, ef1, ei1, p1 = make_problem(k1, 12, 24, 8, 4, 16)
    out1 = jax.block_until_ready(
        graph_attention_layer_v2(nf1, ef1, ei1, p1, scaling=scaling))
    ref1 = _reference(nf1, ef1, ei1, p1, scaling)
    assert out1.shape == ref1.shape
    err1 = float(jnp.max(jnp.abs(out1 - ref1)))
    assert jnp.allclose(out1, ref1, atol=2e-2, rtol=2e-2), f"bf16 path max err {err1}"

    # Case 2: larger graph, precise f32 path, multi-block edge grid + 2-core split.
    nf2, ef2, ei2, p2 = make_problem(k2, 40, 300, 8, 4, 16)
    out2 = jax.block_until_ready(
        graph_attention_layer_v2(nf2, ef2, ei2, p2, scaling=scaling,
                                 compute_dtype=jnp.float32, edge_tile=128))
    ref2 = _reference(nf2, ef2, ei2, p2, scaling)
    err2 = float(jnp.max(jnp.abs(out2 - ref2)))
    assert jnp.allclose(out2, ref2, atol=1e-4, rtol=1e-4), f"f32 path max err {err2}"

    # Case 3: same graph, bf16 fast path, multi-block edge grid + 2-core split.
    out3 = jax.block_until_ready(
        graph_attention_layer_v2(nf2, ef2, ei2, p2, scaling=scaling, edge_tile=128))
    err3 = float(jnp.max(jnp.abs(out3 - ref2)))
    assert jnp.allclose(out3, ref2, atol=2e-2, rtol=2e-2), f"bf16 multiblock max err {err3}"

    print("KERNEL_OK")
</pallas_src>

<mosaic_0001>
module attributes {stable_mosaic.version = 11 : i64} {
  func.func @_gat_v2_kernel(%arg0: i32, %arg1: i32, %arg2: memref<16x128xbf16, #tpu.memory_space<any>>, %arg3: memref<24x1xf32, #tpu.memory_space<vmem>>, %arg4: memref<24x1xi32, #tpu.memory_space<vmem>>, %arg5: memref<1x24xi32, #tpu.memory_space<vmem>>, %arg6: memref<16x128xf32, #tpu.memory_space<vmem>>, %arg7: memref<16x128xbf16, #tpu.memory_space<vmem>>, %arg8: memref<!tpu.dma_semaphore, #tpu.memory_space<semaphore_mem>>) attributes {dimension_semantics = [#tpu.dimension_semantics<parallel>, #tpu.dimension_semantics<arbitrary>], iteration_bounds = array<i64: 1, 1>, scalar_prefetch = 0 : i64, scratch_operands = 2 : i64, tpu.core_type = #tpu.core_type<tc>, window_params = [{}, {transform_indices = @transform_1, window_bounds = array<i64: 24, 1>}, {transform_indices = @transform_2, window_bounds = array<i64: 24, 1>}, {transform_indices = @transform_3, window_bounds = array<i64: 1, 24>}, {transform_indices = @transform_4, window_bounds = array<i64: 16, 128>}]} {
    %c0_i32 = arith.constant 0 : i32
    %0 = arith.cmpi eq, %arg1, %c0_i32 : i32
    %1 = arith.extui %0 : i1 to i32
    %c0_i32_0 = arith.constant 0 : i32
    %2 = arith.cmpi ne, %1, %c0_i32_0 : i32
    scf.if %2 {
      tpu.enqueue_dma source(%arg2 : memref<16x128xbf16, #tpu.memory_space<any>>) target(%arg7 : memref<16x128xbf16, #tpu.memory_space<vmem>>) target_semaphore(%arg8 : memref<!tpu.dma_semaphore, #tpu.memory_space<semaphore_mem>>)
      tpu.wait_dma2 semaphore(%arg8 : memref<!tpu.dma_semaphore, #tpu.memory_space<semaphore_mem>>) src(%arg2 : memref<16x128xbf16, #tpu.memory_space<any>>) dst(%arg7 : memref<16x128xbf16, #tpu.memory_space<vmem>>)
      %cst_13 = arith.constant 0.000000e+00 : f32
      %28 = vector.broadcast %cst_13 : f32 to vector<16x128xf32>
      %c0_14 = arith.constant 0 : index
      %c0_15 = arith.constant 0 : index
      %29 = vector.load %arg6[%c0_14, %c0_15] : memref<16x128xf32, #tpu.memory_space<vmem>>, vector<16x128xf32>
      tpu.vector_store %arg6[%c0_14, %c0_15], %28 {strides = array<i32>} : memref<16x128xf32, #tpu.memory_space<vmem>>, vector<16x128xf32>,
    } else {
    }
    %3 = tpu.iota {dimensions = array<i32: 1>} : vector<24x16xi32>
    %4 = tpu.iota {dimensions = array<i32: 0>} : vector<16x24xi32>
    %c0 = arith.constant 0 : index
    %c0_1 = arith.constant 0 : index
    %5 = vector.load %arg4[%c0, %c0_1] : memref<24x1xi32, #tpu.memory_space<vmem>>, vector<24x1xi32>
    %6 = vector.broadcast %5 : vector<24x1xi32> to vector<24x16xi32>
    %7 = arith.cmpi eq, %6, %3 : vector<24x16xi32>
    %8 = arith.extui %7 : vector<24x16xi1> to vector<24x16xi32>
    %9 = arith.sitofp %8 : vector<24x16xi32> to vector<24x16xf32>
    %10 = arith.truncf %9 : vector<24x16xf32> to vector<24x16xbf16>
    %c0_2 = arith.constant 0 : index
    %c0_3 = arith.constant 0 : index
    %11 = vector.load %arg5[%c0_2, %c0_3] : memref<1x24xi32, #tpu.memory_space<vmem>>, vector<1x24xi32>
    %12 = vector.broadcast %11 : vector<1x24xi32> to vector<16x24xi32>
    %13 = arith.cmpi eq, %12, %4 : vector<16x24xi32>
    %14 = arith.extui %13 : vector<16x24xi1> to vector<16x24xi32>
    %15 = arith.sitofp %14 : vector<16x24xi32> to vector<16x24xf32>
    %16 = arith.truncf %15 : vector<16x24xf32> to vector<16x24xbf16>
    %c0_4 = arith.constant 0 : index
    %c0_5 = arith.constant 0 : index
    %17 = vector.load %arg7[%c0_4, %c0_5] : memref<16x128xbf16, #tpu.memory_space<vmem>>, vector<16x128xbf16>
    %cst = arith.constant dense<0.000000e+00> : vector<24x128xf32>
    %18 = tpu.matmul %10, %17, %cst {dimension_numbers = #tpu.dot_dimension_numbers<[1], [0], [0], [1], [0, 0, 1, 1], [], []>} : vector<24x16xbf16>, vector<16x128xbf16>, vector<24x128xf32> -> vector<24x128xf32>
    %c0_6 = arith.constant 0 : index
    %c0_7 = arith.constant 0 : index
    %19 = vector.load %arg3[%c0_6, %c0_7] : memref<24x1xf32, #tpu.memory_space<vmem>>, vector<24x1xf32>
    %20 = math.exp %19 : vector<24x1xf32>
    %21 = vector.broadcast %20 : vector<24x1xf32> to vector<24x128xf32>
    %22 = arith.mulf %21, %18 : vector<24x128xf32>
    %23 = arith.truncf %22 : vector<24x128xf32> to vector<24x128xbf16>
    %c0_8 = arith.constant 0 : index
    %c0_9 = arith.constant 0 : index
    %24 = vector.load %arg6[%c0_8, %c0_9] : memref<16x128xf32, #tpu.memory_space<vmem>>, vector<16x128xf32>
    %cst_10 = arith.constant dense<0.000000e+00> : vector<16x128xf32>
    %25 = tpu.matmul %16, %23, %cst_10 {dimension_numbers = #tpu.dot_dimension_numbers<[1], [0], [0], [1], [0, 0, 1, 1], [], []>} : vector<16x24xbf16>, vector<24x128xbf16>, vector<16x128xf32> -> vector<16x128xf32>
    %26 = arith.addf %24, %25 : vector<16x128xf32>
    %c0_11 = arith.constant 0 : index
    %c0_12 = arith.constant 0 : index
    %27 = vector.load %arg6[%c0_11, %c0_12] : memref<16x128xf32, #tpu.memory_space<vmem>>, vector<16x128xf32>
    tpu.vector_store %arg6[%c0_11, %c0_12], %26 {strides = array<i32>} : memref<16x128xf32, #tpu.memory_space<vmem>>, vector<16x128xf32>,
    return
  }
  func.func @transform_1(%arg0: i32, %arg1: i32) -> (i32, i32) {
    %c1_i32 = arith.constant 1 : i32
    %0 = arith.muli %arg0, %c1_i32 : i32
    %1 = arith.addi %0, %arg1 : i32
    %c0_i32 = arith.constant 0 : i32
    %c0_i32_0 = arith.constant 0 : i32
    return %1, %c0_i32 : i32, i32
  }
  func.func @transform_2(%arg0: i32, %arg1: i32) -> (i32, i32) {
    %c1_i32 = arith.constant 1 : i32
    %0 = arith.muli %arg0, %c1_i32 : i32
    %1 = arith.addi %0, %arg1 : i32
    %c0_i32 = arith.constant 0 : i32
    %c0_i32_0 = arith.constant 0 : i32
    return %1, %c0_i32 : i32, i32
  }
  func.func @transform_3(%arg0: i32, %arg1: i32) -> (i32, i32) {
    %c1_i32 = arith.constant 1 : i32
    %0 = arith.muli %arg0, %c1_i32 : i32
    %1 = arith.addi %0, %arg1 : i32
    %c0_i32 = arith.constant 0 : i32
    %c0_i32_0 = arith.constant 0 : i32
    return %c0_i32, %1 : i32, i32
  }
  func.func @transform_4(%arg0: i32, %arg1: i32) -> (i32, i32) {
    %c0_i32 = arith.constant 0 : i32
    %c0_i32_0 = arith.constant 0 : i32
    return %arg0, %c0_i32 : i32, i32
  }
}

</mosaic_0001>

<bundles_post_ra>
// kernel: tpu_custom_call.1
= control target key start
LH: loop header
LB: loop body
LE: loop exit
PB: predicated region body
PF: predicated region fallthrough
CT: control target
= control target key end

     0   :  { %9 = vsyncpa [#allocation5], 0  ;;  %s404_s0 = inlined_call_operand.vmem [shape: bf16[16,128], index: 0, kind: input, shape index: {}]   ;;  %s405_s1 = inlined_call_operand.vmem [shape: f32[24,1], index: 1, kind: input, shape index: {}]   ;;  %s406_s2 = inlined_call_operand.vmem [shape: s32[24,1], index: 2, kind: input, shape index: {}]   ;;  %s407_s3 = inlined_call_operand.vmem [shape: s32[1,24], index: 3, kind: input, shape index: {}]   ;;  %s408_s4 = inlined_call_operand.hbm [shape: f32[16,128], index: 4, kind: output, shape index: {}]  }
   0x1   :  { %v105_v0 = vld [vmem:[%s404_s0] sm:$0xff] }
   0x2   :  { %106 = vst [vmem:[#allocation2] sm:$0xff] %v105_v0 }
   0x3   :  { %112 = vsyncadd [#allocation3], 128 }
   0x4   :  { %343 = dma.done.wait [#allocation3], 128 }
   0x5   :  { %344 = vsyncadd [#allocation3], 4294967168  ;;  %v347_v1 = vmov 0   ;;  %v126_v2 = vld [vmem:[%s406_s2 + $0x10] sm:$0xff]  ;;  %v125_v3 = vld [vmem:[%s406_s2 + $0x8] sm:$0xff]  ;;  %v119_v14 = vlaneseq  ;;  %v348_v18 = vmov 0.0  }
   0x6   :  { %309 = vset.pattern.permute.xlu0 %v347_v1  ;;  %310 = vset.pattern.permute.xlu1 %v347_v1  ;;  %v191_v4 = vld [vmem:[%s405_s1 + $0x10] sm:$0xff]  ;;  %v124_v6 = vld [vmem:[%s406_s2] sm:$0xff]  ;;  %v190_v11 = vld [vmem:[%s405_s1 + $0x8] sm:$0xff]  ;;  %vm164_vm1 = vcmask 130048   ;;  %vm224_vm4 = vcmask 1043456   ;;  %vm220_vm7 = vcmask 195584  }
   0x7   :  { %311 = vset.pattern.permute.xlu2 %v347_v1  ;;  %134 = vperm.xlu0 %309, %v126_v2   ;;  %v196_v5 = vmul.f32 1.442695, %v191_v4  ;;  %v189_v9 = vld [vmem:[%s405_s1] sm:$0xff]  ;;  %v194_v12 = vmul.f32 1.442695, %v190_v11  ;;  %v120_v16 = vand.u32 127, %v119_v14 }
   0x8   :  { %131 = vperm.xlu1 %310, %v125_v3   ;;  %v192_v10 = vmul.f32 1.442695, %v189_v9  ;;  %v122_v29 = vshrl.u32 %v119_v14, 7  ;;  %v312_v34 = vld [vmem:[%s407_s3] ss:$0 sm:$0xff]  ;;  %s349_s28 = smov [#allocation4]  }
   0x9   :  { %313 = vpow2.f32 %v196_v5  ;;  %v302_v8 = vld [vmem:[#allocation2] sm:$0xff]  ;;  %s250_s3 = sshll.u32 %s349_s28, 4  ;;  %s252_s5 = sshll.u32 %s408_s4, 4  ;;  %s251_s3 = int_to_ptr.vmem [resolvable:$true] %s250_s3  ;;  %s253_s5 = int_to_ptr.hbm [resolvable:$true] %s252_s5 }
   0xa   :  { %303 = vmatpush.bf16.msra.mxu2 %v302_v8  ;;  %178 = vmatpush.bf16.msra.mxu0 %v302_v8  ;;  %315 = vpow2.f32 %v192_v10  ;;  %v123_v33 = vadd.s32 8, %v122_v29  ;;  %vm149_vm5 = vcmp.eq.s32.totalorder %v312_v34, %v122_v29  ;;  %s350_s6 = smov 128   ;;  %s351_s7 = smov 8  }
   0xb   :  { %317 = vpow2.f32 %v194_v12  ;;  %v292_v41 = vsel %vm149_vm5, 1.0, %v348_v18 }
   0xc   :  { %vm150_vm6 = vcmp.eq.s32.totalorder %v312_v34, %v123_v33 }
   0xd   :  { %v293_v42 = vsel %vm150_vm6, 1.0, %v348_v18 }
   0xe   :  { %v155_v44 = vpack.c.bf16 %v293_v42, %v292_v41 }
   0xf   :  { %128 = vperm.xlu0 %309, %v124_v6   ;;  %v314_v7 = vpop.eup %313 }
  0x10   :  { %210 = vperm.xlu1 %310, %v314_v7   ;;  %v316_v13 = vpop.eup %315 }
  0x11   :  { %200 = vperm.xlu2 %311, %v316_v13   ;;  %v318_v15 = vpop.eup %317 }
  0x19   :  { %205 = vperm.xlu2 %311, %v318_v15  }
  0x6b   :  { %v201_v27 = vpop.permute.xlu2 %200 }
  0x73   :  { %v206_v37 = vpop.permute.xlu2 %205 }
  0x79   :  { %v135_v17 = vpop.permute.xlu0 %134 }
  0x7a   :  { %vm138_vm0 = vcmp.eq.s32.totalorder %v135_v17, %v120_v16  ;;  %v132_v21 = vpop.permute.xlu1 %131 }
  0x7b   :  { %v291_v19 = vsel %vm138_vm0, 1.0, %v348_v18  ;;  %vm137_vm2 = vcmp.eq.s32.totalorder %v132_v21, %v120_v16 }
  0x7c   :  { %v146_v20 = vpack.c.bf16 %v291_v19, %v291_v19  ;;  %v290_v22 = vsel %vm137_vm2, 1.0, %v348_v18 }
  0x7e   :  { %299 = vmatmul.msk.bf16.vlgmr.msra.gmra.mxu2 %vm164_vm1, %v146_v20 }
  0x81   :  { %v129_v23 = vpop.permute.xlu0 %128 }
  0x82   :  { %vm136_vm3 = vcmp.eq.s32.totalorder %v129_v23, %v120_v16  ;;  %v211_v26 = vpop.permute.xlu1 %210 }
  0x83   :  { %v289_v24 = vsel %vm136_vm3, 1.0, %v348_v18 }
  0x84   :  { %v145_v25 = vpack.c.bf16 %v290_v22, %v289_v24 }
  0x86   :  { %298 = vmatmul.msk.bf16.vlgmr.msra.gmra.mxu0 %vm164_vm1, %v145_v25 }
 0x101   :  { %v185_v28 = vpop.f32.mrf.mxu2 }
 0x102   :  { %v215_v30 = vmul.f32 %v211_v26, %v185_v28 }
 0x103   :  { %v180_v31 = vpop.f32.mrf.mxu0 }
 0x104   :  { %v217_v32 = vpack.c.bf16 %v215_v30, %v215_v30  ;;  %v213_v39 = vmul.f32 %v201_v27, %v180_v31 }
 0x106   :  { %v226_v35 = vsel %vm224_vm4, %v217_v32, 0 }
 0x107   :  { %234 = vmatpush.bf16.msra.mxu1 %v226_v35 }
 0x109   :  { %v187_v36 = vpop.f32.mrf.mxu2 }
 0x10b   :  { %v182_v38 = vpop.f32.mrf.mxu0 }
 0x10c   :  { %v214_v40 = vmul.f32 %v206_v37, %v182_v38 }
 0x10e   :  { %v216_v43 = vpack.c.bf16 %v214_v40, %v213_v39 }
 0x110   :  { %235 = vmatpush.bf16.msra.mxu1 %v216_v43 }
 0x113   :  { %300 = vmatmul.msk.bf16.vlgmr.msra.gmra.mxu1 %vm220_vm7, %v155_v44 }
 0x190   :  { %v237_v45 = vpop.f32.mrf.mxu1 }
 0x191   :  { %244 = vst [vmem:[#allocation4] sm:$0xff] %v237_v45 }
 0x198   :  { %v239_v46 = vpop.f32.mrf.mxu1 }
 0x199   :  { %245 = vst [vmem:[#allocation4 + $0x8] sm:$0xff] %v239_v46 }
 0x19a   :  { %258 = dma.vmem_to_hbm [thread:$0]  %s251_s3, 256, %s253_s5, [#allocation5], %s350_s6, %s350_s6, %s351_s7  }
 0x19b   :  { %345 = dma.done.wait [#allocation5], 256  }
 0x19c   :  { %346 = vsyncadd [#allocation5], 4294967040 }
 0x19d   :  { %263 = vsyncpa [#allocation5], 1 }
 0x19e   :  { %264 = vsyncmov [#allocation3] }
 0x1a1   :  { %s265_s8 = vpop.sfrf %264 }
 0x1a2   :  { %p301_p0 = scmp.ne.s32.totalorder %s265_s8, 0 }
 0x1a4   :  { %269 = shalt.err (%p301_p0)  }

</bundles_post_ra>
